<compile_context>
chip_gen: v7x
topology: tpu7x:2x2x1
jax: 0.10.0
libtpu: 0.0.40
codegen_flags: <defaults>
</compile_context>

<pallas_src>
import math

import jax
import jax.numpy as jnp
from jax.experimental import pallas as pl
from jax.experimental.pallas import tpu as pltpu


def _round_up(x, m):
    return ((x + m - 1) // m) * m


# ---------------------------------------------------------------------------
# Kernel 1: Wh = h @ W  and  Wh12 = h @ [W@a1 | W@a2 | 0...]   (row tiled)
# ---------------------------------------------------------------------------
def _wh_kernel(h_ref, w_ref, w12_ref, wh_ref, wh12_ref):
    ht = h_ref[...]
    wh_ref[...] = jnp.dot(ht, w_ref[...],
                          preferred_element_type=jnp.float32).astype(wh_ref.dtype)
    wh12_ref[...] = jnp.dot(ht, w12_ref[...],
                            preferred_element_type=jnp.float32)


# ---------------------------------------------------------------------------
# Kernel 2: masked-softmax attention + aggregation for one tile of tm rows
# ---------------------------------------------------------------------------
def _make_gat_kernel(leaky_alpha, concat):
    # max-based LeakyReLU is only valid for 0 <= alpha < 1 (standard GAT: 0.2).
    use_max = 0.0 <= leaky_alpha < 1.0

    def kernel(bias_ref, wh_ref, wh1_ref, wh2_ref, o_ref):
        # (tm,1) + (1,N) broadcast — both vectors are precomputed by kernel 1.
        e = wh1_ref[...] + wh2_ref[...]                        # (tm, N) f32
        if use_max:
            e = jnp.maximum(e, leaky_alpha * e)                # LeakyReLU, 1 VPU op
        else:
            e = jnp.where(e > 0, e, leaky_alpha * e)
        e = e + bias_ref[...].astype(jnp.float32)              # additive -9e15 mask

        # Row softmax, normalization deferred until after the aggregation matmul.
        m = jnp.max(e, axis=1, keepdims=True)
        p = jnp.exp(e - m)                                     # unnormalized weights
        s = jnp.sum(p, axis=1, keepdims=True)

        hp = jnp.dot(p.astype(wh_ref.dtype), wh_ref[...],
                     preferred_element_type=jnp.float32)       # (tm, Fp)
        hp = hp * pl.reciprocal(s, approx=True)                # normalize (tm,Fp) only
        if concat:
            # ELU(alpha=1); exp argument clamped at 0 so the discarded branch never
            # produces inf (expm1 equivalent to within f32 rounding).
            hp = jnp.where(hp > 0, hp, jnp.exp(jnp.minimum(hp, 0.0)) - 1.0)
        o_ref[...] = hp.astype(o_ref.dtype)

    return kernel


def _vmem_limit(need_bytes):
    # Don't artificially clamp at 48 MiB (v5e/v6e have 128 MiB physical); stay modest
    # when the actual working set is small.
    return int(min(max(need_bytes + (16 << 20), 32 << 20), 100 << 20))


# ---------------------------------------------------------------------------
# Wrapper
# ---------------------------------------------------------------------------
def gat_layer(h, adj, W, a, *, leaky_alpha=0.2, concat=True, tm=128,
              agg_dtype=jnp.float32, mask_dtype=jnp.bfloat16):
    """Pallas implementation of GraphAttentionLayer.forward (inference).

    agg_dtype=jnp.bfloat16 halves the resident Wh footprint and uses native bf16 MXU
    issue for the aggregation (recommended on v7x / large f_out), at a small accuracy
    cost; default keeps f32 for exactness vs. the reference.
    """
    # TODO(synk): training-mode attention dropout (F.dropout) is not implemented;
    # the module's forward reduces to identity there when training=False.
    N, f_in = h.shape
    f_in_w, f_out = W.shape
    assert f_in_w == f_in
    assert a.shape == (2 * f_out, 1)

    tm = min(tm, N)
    assert N % tm == 0 and (tm == N or tm % 8 == 0), \
        "pad the node count to a multiple of the row tile for real graphs"

    # Lane-dense feature padding (F_out -> multiple of 128) so the aggregation output
    # and the final store are full-lane vst (no masked partial stores).
    f_pad = _round_up(f_out, 128)
    h32 = h.astype(jnp.float32)
    W32 = W.astype(jnp.float32)
    a1 = a[:f_out, :].astype(jnp.float32)                      # (f_out, 1)
    a2 = a[f_out:, :].astype(jnp.float32)                      # (f_out, 1)

    if f_pad != f_out:
        W_p = jnp.zeros((f_in, f_pad), jnp.float32).at[:, :f_out].set(W32)
    else:
        W_p = W32
    # Fold the attention vector into kernel 1's pass over h: Wh@a1 == h@(W@a1).
    W12 = jnp.zeros((f_in, 128), jnp.float32)
    W12 = W12.at[:, 0:1].set(W32 @ a1)
    W12 = W12.at[:, 1:2].set(W32 @ a2)

    # adj is only an (adj > 0) mask -> precompute an additive softmax bias once and
    # stream the dominant N*N slab at half width.
    # TODO(synk): for v5e (HBM-bound) an int8 adjacency stream + in-kernel compare
    # would halve the N^2 bytes again.
    mask_bias = jnp.where(adj > 0, 0.0, -9e15).astype(mask_dtype)
    mask_bytes = jnp.dtype(mask_dtype).itemsize
    agg_bytes = jnp.dtype(agg_dtype).itemsize

    grid = (N // tm,)

    # ---- kernel 1: Wh / Wh12 = h @ [W | Wa1 | Wa2] -----------------------------
    need_a = (2 * tm * f_in * 4 + 2 * f_in * f_pad * 4 + 2 * f_in * 128 * 4
              + 2 * tm * f_pad * agg_bytes + 2 * tm * 128 * 4)
    wh, wh12 = pl.pallas_call(
        _wh_kernel,
        out_shape=(jax.ShapeDtypeStruct((N, f_pad), agg_dtype),
                   jax.ShapeDtypeStruct((N, 128), jnp.float32)),
        grid_spec=pltpu.PrefetchScalarGridSpec(
            num_scalar_prefetch=0,
            grid=grid,
            in_specs=[
                pl.BlockSpec((tm, f_in), lambda i: (i, 0)),      # h row tile
                pl.BlockSpec((f_in, f_pad), lambda i: (0, 0)),   # W (resident)
                pl.BlockSpec((f_in, 128), lambda i: (0, 0)),     # [Wa1|Wa2] (resident)
            ],
            out_specs=[
                pl.BlockSpec((tm, f_pad), lambda i: (i, 0)),
                pl.BlockSpec((tm, 128), lambda i: (i, 0)),
            ],
        ),
        compiler_params=pltpu.CompilerParams(
            dimension_semantics=("parallel",),
            vmem_limit_bytes=_vmem_limit(need_a)),
        cost_estimate=pl.CostEstimate(
            flops=2 * N * f_in * (f_pad + 128),
            transcendentals=0,
            bytes_accessed=4 * (N * f_in + f_in * (f_pad + 128) + N * 128)
                           + agg_bytes * N * f_pad),
    )(h32, W_p, W12)

    # Tiny (N-element) slices done once in the wrapper; everything N^2 stays in-kernel.
    wh1_col = wh12[:, 0:1]                    # (N, 1)  == Wh @ a1
    wh2_row = wh12[:, 1:2].reshape(1, N)      # (1, N)  == (Wh @ a2)^T

    # ---- kernel 2: masked-softmax attention + aggregation ----------------------
    # TODO(synk): for very large graphs (v7x 64 MiB VMEM) switch to a K-tiled
    # online-softmax variant so resident Wh + the (tm, N) bias slab keep fitting;
    # single-buffering the resident specs (pl.Buffered(1)) would also halve their
    # footprint once that pipeline_mode path is relied upon.
    kernel = _make_gat_kernel(float(leaky_alpha), bool(concat))
    need_b = (2 * tm * N * mask_bytes + 2 * N * f_pad * agg_bytes
              + 2 * tm * 4 + 2 * N * 4 + 2 * tm * f_pad * 4
              + 3 * tm * N * 4)                                  # live e/p f32 slabs
    out = pl.pallas_call(
        kernel,
        out_shape=jax.ShapeDtypeStruct((N, f_pad), jnp.float32),
        grid_spec=pltpu.PrefetchScalarGridSpec(
            num_scalar_prefetch=0,
            grid=grid,
            in_specs=[
                pl.BlockSpec((tm, N), lambda i: (i, 0)),         # mask bias (bf16 stream)
                pl.BlockSpec((N, f_pad), lambda i: (0, 0)),      # Wh resident
                pl.BlockSpec((tm, 1), lambda i: (i, 0)),         # Wh@a1 row tile
                pl.BlockSpec((1, N), lambda i: (0, 0)),          # (Wh@a2)^T resident
            ],
            out_specs=pl.BlockSpec((tm, f_pad), lambda i: (i, 0)),
        ),
        compiler_params=pltpu.CompilerParams(
            dimension_semantics=("parallel",),
            vmem_limit_bytes=_vmem_limit(need_b)),
        cost_estimate=pl.CostEstimate(
            flops=2 * N * N * f_pad + 6 * N * N,
            transcendentals=N * N + N,
            bytes_accessed=N * N * mask_bytes + agg_bytes * N * f_pad
                           + 4 * N * f_pad + 8 * N),
    )(mask_bias, wh, wh1_col, wh2_row)

    return out[:, :f_out] if f_pad != f_out else out


# ---------------------------------------------------------------------------
# Pure-JAX reference (mirrors the PyTorch forward, eval mode)
# ---------------------------------------------------------------------------
def _reference(h, adj, W, a, leaky_alpha, concat):
    Wh = h @ W
    f_out = W.shape[1]
    Wh1 = Wh @ a[:f_out, :]
    Wh2 = Wh @ a[f_out:, :]
    e = Wh1 + Wh2.T
    e = jnp.where(e > 0, e, leaky_alpha * e)            # LeakyReLU
    att = jnp.where(adj > 0, e, -9e15)
    att = jax.nn.softmax(att, axis=1)
    h_prime = att @ Wh
    return jax.nn.elu(h_prime) if concat else h_prime


if __name__ == "__main__":
    N, F_IN, F_OUT = 256, 64, 32
    LEAKY_ALPHA = 0.2   # stand-in for config.leakRl_Alpha (standard GAT value)

    key = jax.random.PRNGKey(0)
    k_adj, k_h, k_w, k_a = jax.random.split(key, 4)

    # Sparse-ish 0/1 adjacency with self loops (every node has >= 1 neighbour).
    adj = (jax.random.uniform(k_adj, (N, N)) < 0.1).astype(jnp.float32)
    adj = jnp.maximum(adj, jnp.eye(N, dtype=jnp.float32))

    h = jax.random.normal(k_h, (N, F_IN), dtype=jnp.float32)

    # xavier_uniform_ with gain 1.414 (as in the module's __init__).
    gain = 1.414
    bw = gain * math.sqrt(6.0 / (F_IN + F_OUT))
    W = jax.random.uniform(k_w, (F_IN, F_OUT), jnp.float32, minval=-bw, maxval=bw)
    ba = gain * math.sqrt(6.0 / (2 * F_OUT + 1))
    a = jax.random.uniform(k_a, (2 * F_OUT, 1), jnp.float32, minval=-ba, maxval=ba)

    ok = True
    for concat in (True, False):
        out = gat_layer(h, adj, W, a, leaky_alpha=LEAKY_ALPHA, concat=concat)
        jax.block_until_ready(out)
        ref = _reference(h, adj, W, a, LEAKY_ALPHA, concat)
        ok &= out.shape == (N, F_OUT)
        ok &= bool(jnp.allclose(out, ref, atol=2e-3, rtol=2e-3))

    if ok:
        print("KERNEL_OK")
</pallas_src>

<mosaic_0001>
module attributes {stable_mosaic.version = 11 : i64} {
  func.func @_wh_kernel(%arg0: i32, %arg1: memref<128x64xf32, #tpu.memory_space<vmem>>, %arg2: memref<64x128xf32, #tpu.memory_space<vmem>>, %arg3: memref<64x128xf32, #tpu.memory_space<vmem>>, %arg4: memref<128x128xf32, #tpu.memory_space<vmem>>, %arg5: memref<128x128xf32, #tpu.memory_space<vmem>>) attributes {dimension_semantics = [#tpu.dimension_semantics<parallel>], iteration_bounds = array<i64: 2>, scalar_prefetch = 0 : i64, scratch_operands = 0 : i64, tpu.core_type = #tpu.core_type<tc>, window_params = [{transform_indices = @transform_0, window_bounds = array<i64: 128, 64>}, {pipeline_mode = #tpu.pipeline_mode<synchronous>, transform_indices = @transform_1, window_bounds = array<i64: 64, 128>}, {pipeline_mode = #tpu.pipeline_mode<synchronous>, transform_indices = @transform_2, window_bounds = array<i64: 64, 128>}, {transform_indices = @transform_3, window_bounds = array<i64: 128, 128>}, {transform_indices = @transform_4, window_bounds = array<i64: 128, 128>}]} {
    %c0 = arith.constant 0 : index
    %c0_0 = arith.constant 0 : index
    %0 = vector.load %arg1[%c0, %c0_0] : memref<128x64xf32, #tpu.memory_space<vmem>>, vector<128x64xf32>
    %c0_1 = arith.constant 0 : index
    %c0_2 = arith.constant 0 : index
    %1 = vector.load %arg2[%c0_1, %c0_2] : memref<64x128xf32, #tpu.memory_space<vmem>>, vector<64x128xf32>
    %cst = arith.constant dense<0.000000e+00> : vector<128x128xf32>
    %2 = tpu.matmul %0, %1, %cst {dimension_numbers = #tpu.dot_dimension_numbers<[1], [0], [0], [1], [0, 0, 1, 1], [], []>} : vector<128x64xf32>, vector<64x128xf32>, vector<128x128xf32> -> vector<128x128xf32>
    %c0_3 = arith.constant 0 : index
    %c0_4 = arith.constant 0 : index
    %3 = vector.load %arg4[%c0_3, %c0_4] : memref<128x128xf32, #tpu.memory_space<vmem>>, vector<128x128xf32>
    tpu.vector_store %arg4[%c0_3, %c0_4], %2 {strides = array<i32>} : memref<128x128xf32, #tpu.memory_space<vmem>>, vector<128x128xf32>,
    %c0_5 = arith.constant 0 : index
    %c0_6 = arith.constant 0 : index
    %4 = vector.load %arg3[%c0_5, %c0_6] : memref<64x128xf32, #tpu.memory_space<vmem>>, vector<64x128xf32>
    %cst_7 = arith.constant dense<0.000000e+00> : vector<128x128xf32>
    %5 = tpu.matmul %0, %4, %cst_7 {dimension_numbers = #tpu.dot_dimension_numbers<[1], [0], [0], [1], [0, 0, 1, 1], [], []>} : vector<128x64xf32>, vector<64x128xf32>, vector<128x128xf32> -> vector<128x128xf32>
    %c0_8 = arith.constant 0 : index
    %c0_9 = arith.constant 0 : index
    %6 = vector.load %arg5[%c0_8, %c0_9] : memref<128x128xf32, #tpu.memory_space<vmem>>, vector<128x128xf32>
    tpu.vector_store %arg5[%c0_8, %c0_9], %5 {strides = array<i32>} : memref<128x128xf32, #tpu.memory_space<vmem>>, vector<128x128xf32>,
    return
  }
  func.func @transform_0(%arg0: i32) -> (i32, i32) {
    %c0_i32 = arith.constant 0 : i32
    %c0_i32_0 = arith.constant 0 : i32
    return %arg0, %c0_i32 : i32, i32
  }
  func.func @transform_1(%arg0: i32) -> (i32, i32) {
    %c0_i32 = arith.constant 0 : i32
    %c0_i32_0 = arith.constant 0 : i32
    %c0_i32_1 = arith.constant 0 : i32
    return %c0_i32, %c0_i32_0 : i32, i32
  }
  func.func @transform_2(%arg0: i32) -> (i32, i32) {
    %c0_i32 = arith.constant 0 : i32
    %c0_i32_0 = arith.constant 0 : i32
    %c0_i32_1 = arith.constant 0 : i32
    return %c0_i32, %c0_i32_0 : i32, i32
  }
  func.func @transform_3(%arg0: i32) -> (i32, i32) {
    %c0_i32 = arith.constant 0 : i32
    %c0_i32_0 = arith.constant 0 : i32
    return %arg0, %c0_i32 : i32, i32
  }
  func.func @transform_4(%arg0: i32) -> (i32, i32) {
    %c0_i32 = arith.constant 0 : i32
    %c0_i32_0 = arith.constant 0 : i32
    return %arg0, %c0_i32 : i32, i32
  }
}

</mosaic_0001>

<bundles_post_ra>
// kernel: tpu_custom_call.1
= control target key start
LH: loop header
LB: loop body
LE: loop exit
PB: predicated region body
PF: predicated region fallthrough
CT: control target
= control target key end

     0   :  { %10 = vsyncpa [#allocation3], 0  ;;  %s1402_s0 = inlined_call_operand.vmem [shape: f32[256,64], index: 0, kind: input, shape index: {}]   ;;  %s1403_s1 = inlined_call_operand.vmem [shape: f32[64,128], index: 1, kind: input, shape index: {}]   ;;  %s1404_s2 = inlined_call_operand.vmem [shape: f32[64,128], index: 2, kind: input, shape index: {}]   ;;  %s1405_s3 = inlined_call_operand.hbm [shape: f32[256,128], index: 3, kind: output, shape index: {0}]   ;;  %s1406_s4 = inlined_call_operand.hbm [shape: f32[256,128], index: 4, kind: output, shape index: {1}]  }
   0x1   :  { %12 = vsyncpa [#allocation3 + $0x1], 0 }
   0x2   :  { %13 = vsyncpa [#allocation5], 0 }
   0x3   :  { %15 = vsyncpa [#allocation5 + $0x1], 0  ;;  %s1124_s15 = smov 0   ;;  %s1126_s16 = smov 0  }
   0x4   :  { %s1128_s17 = smov 0   ;;  %s1130_s18 = smov 0  }
   0x5 LB: > { %s1145_s19 = sadd.s32 4294967295, %s1093_s18   ;;  %s743_s20 = sadd.s32 4294967294, %s1093_s18   ;;  %s1093_s18 = sphi %s1130_s18, %s1412_s18   ;;  %s1089_s17 = sphi %s1128_s17, %s1411_s17   ;;  %s1085_s16 = sphi %s1126_s16, %s1410_s16   ;;  %s1081_s15 = sphi %s1124_s15, %s1409_s15  }
   0x6   : > { %s1149_s21 = sadd.s32 1, %s1093_s18   ;;  %s96_s22 = sadd.s32 1, %s1089_s17 }
   0x7   : > { %s93_s23 = ssub.s32 %s1093_s18, %s1149_s21  ;;  %p106_p0 = scmp.ne.s32.totalorder %s1089_s17, %s1085_s16 }
   0x8   : > { %p94_p1 = scmp.eq.s32.totalorder %s93_s23, 0  ;;  %p107_p2 = scmp.eq.s32.totalorder %s1145_s19, 1 }
   0x9   : > { %p112_p3 = scmp.ne.s32.totalorder %s1085_s16, %s1081_s15  ;;  %p113_p4 = scmp.eq.s32.totalorder %s743_s20, 1 }
   0xa   : > { %s1160_s24 = scalar_select %p94_p1, %s1089_s17, %s96_s22  }
   0xb   : > { %p1162_p5 = por %p107_p2, %p106_p0  ;;  %p1166_p6 = por %p113_p4, %p112_p3 }
   0xc   : > { %p746_p7 = scmp.ge.s32.totalorder %s1093_s18, 1  ;;  %p172_p8 = scmp.lt.s32.totalorder %s1093_s18, 3 }
   0xe   : > { %p173_p9 = pnand %p746_p7, %p172_p8 }
   0xf   : > { %v227_v0 = vld [vmem:[%s1403_s1] sm:$0xff] (!%p173_p9)  ;;  %v228_v1 = vld [vmem:[%s1403_s1 + $0x8] sm:$0xff] (!%p173_p9)  ;;  %s749_s7 = sshll.u32 (!%p173_p9), %s1145_s19, 4  ;;  %v229_v5 = vld [vmem:[%s1403_s1 + $0x10] sm:$0xff] (!%p173_p9)  ;;  %vm235_vm0 = vcmask (!%p173_p9), 523264   ;;  %s1275_s30 = sand.u32 (!%p173_p9), 1, %s1085_s16  }
  0x10   : > { %176 = sbr.rel (%p173_p9) target bundleno = 314 (0x13a), region = 32  ;;  %v445_v2 = vld [vmem:[%s1404_s2] sm:$0xff] (!%p173_p9)  ;;  %v921_v3 = vpack.c.bf16 (!%p173_p9), %v228_v1, %v227_v0  ;;  %v446_v4 = vld [vmem:[%s1404_s2 + $0x8] sm:$0xff] (!%p173_p9)  ;;  %v230_v6 = vld [vmem:[%s1403_s1 + $0x18] sm:$0xff] (!%p173_p9)  ;;  %p204_p10 = scmp.lt.s32.totalorder (!%p173_p9), %s749_s7, 31 }
  0x11   : > { %v937_v7 = vpack.c.bf16 (!%p173_p9), %v446_v4, %v445_v2  ;;  %v925_v8 = vpack.c.bf16 (!%p173_p9), %v230_v6, %v229_v5  ;;  %v447_v9 = vld [vmem:[%s1404_s2 + $0x10] sm:$0xff] (!%p173_p9)  ;;  %v448_v10 = vld [vmem:[%s1404_s2 + $0x18] sm:$0xff] (!%p173_p9)  ;;  %v231_v11 = vld [vmem:[%s1403_s1 + $0x20] sm:$0xff] (!%p173_p9)  ;;  %s747_s5 = sshll.u32 (!%p173_p9), %s1275_s30, 7  ;;  %s791_s9 = sshll.u32 (!%p173_p9), %s1145_s19, 11 }
  0x12   : > { %922 = vmatprep.subr.bf16.mxu0 (!%p173_p9), %v921_v3  ;;  %v941_v12 = vpack.c.bf16 (!%p173_p9), %v448_v10, %v447_v9  ;;  %v232_v13 = vld [vmem:[%s1403_s1 + $0x28] sm:$0xff] (!%p173_p9)  ;;  %v449_v14 = vld [vmem:[%s1404_s2 + $0x20] sm:$0xff] (!%p173_p9)  ;;  %v233_v18 = vld [vmem:[%s1403_s1 + $0x30] sm:$0xff] (!%p173_p9)  ;;  %s1278_s6 = scalar_lea.vmem (!%p173_p9), [#allocation2], %s747_s5  ;;  %s1281_s8 = scalar_lea.vmem (!%p173_p9), [#allocation4], %s747_s5 }
  0x13   : > { %v450_v15 = vld [vmem:[%s1404_s2 + $0x28] sm:$0xff] (!%p173_p9)  ;;  %938 = vmatprep.subr.bf16.mxu1 (!%p173_p9), %v937_v7  ;;  %924 = vmatpush3.bf16.msra.mxu0 (!%p173_p9), %v921_v3  ;;  %v929_v16 = vpack.c.bf16 (!%p173_p9), %v232_v13, %v231_v11  ;;  %v234_v19 = vld [vmem:[%s1403_s1 + $0x38] sm:$0xff] (!%p173_p9)  ;;  %v451_v20 = vld [vmem:[%s1404_s2 + $0x30] sm:$0xff] (!%p173_p9)  ;;  %s649_s11 = sshll.u32 (!%p173_p9), %s1281_s8, 4  ;;  %s1316_s14 = scalar_lea.hbm (!%p173_p9), %s1405_s3, %s791_s9  ;;  %s1326_s11 = int_to_ptr.vmem [resolvable:$true] %s649_s11 }
  0x14   : > { %940 = vmatpush3.bf16.msra.mxu1 (!%p173_p9), %v937_v7  ;;  %926 = vmatprep.subr.bf16.mxu0 (!%p173_p9), %v925_v8  ;;  %v945_v17 = vpack.c.bf16 (!%p173_p9), %v450_v15, %v449_v14  ;;  %v452_v21 = vld [vmem:[%s1404_s2 + $0x38] sm:$0xff] (!%p173_p9)  ;;  %v933_v23 = vpack.c.bf16 (!%p173_p9), %v234_v19, %v233_v18  ;;  %s1324_s22 = scalar_lea.hbm (!%p173_p9), %s1406_s4, %s791_s9  ;;  %s1095_s28 = smov (!%p173_p9), [#allocation2]  }
  0x15   : > { %942 = vmatprep.subr.bf16.mxu1 (!%p173_p9), %v941_v12  ;;  %v949_v24 = vpack.c.bf16 (!%p173_p9), %v452_v21, %v451_v20 }
  0x17   : > { %s1414_s7 = smov (!%p204_p10, %s749_s7), 31  ;;  %928 = vmatpush3.bf16.msra.mxu0 %v925_v8 }
  0x18   : > { %s750_s10 = sshll.u32 %s1414_s7, 3  ;;  %944 = vmatpush3.bf16.msra.mxu1 %v941_v12  ;;  %930 = vmatprep.subr.bf16.mxu0 %v929_v16  ;;  %s1003_s7 = sshll.u32 %s1095_s28, 4  ;;  %s1004_s7 = int_to_ptr.vmem [resolvable:$false] %s1003_s7 }
  0x19   : > { %s1218_s23 = scalar_lea.vmem %s1402_s0, %s750_s10  ;;  %946 = vmatprep.subr.bf16.mxu1 %v945_v17  ;;  %s633_s10 = sshll.u32 %s1278_s6, 4  ;;  %s1318_s10 = int_to_ptr.vmem [resolvable:$true] %s633_s10 }
  0x1a   : > { %v211_v22 = vld [vmem:[%s1218_s23] sm:$0xff]  ;;  %v212_v25 = vld [vmem:[%s1218_s23 + $0x8] sm:$0xff]  ;;  %v213_v26 = vld [vmem:[%s1218_s23 + $0x10] sm:$0xff]  ;;  %s999_s27 = scalar_lea.vmem %s1318_s10, 2048  ;;  %s1005_s29 = scalar_lea.vmem %s1004_s7, 4096 }
  0x1b   : > { %857 = vmatprep.mubr.msk.f32.mxu0 %vm235_vm0, %v211_v22  ;;  %897 = vmatprep.mubr.msk.f32.mxu1 %vm235_vm0, %v211_v22  ;;  %v214_v27 = vld [vmem:[%s1218_s23 + $0x18] sm:$0xff]  ;;  %v215_v28 = vld [vmem:[%s1218_s23 + $0x20] sm:$0xff]  ;;  %v216_v29 = vld [vmem:[%s1218_s23 + $0x28] sm:$0xff]  ;;  %p1000_p11 = scmp.ne.s32.totalorder %s1318_s10, %s999_s27  ;;  %p1006_p0 = scmp.lt.s32.totalorder %s1318_s10, %s1004_s7 }
  0x1c   : > { %932 = vmatpush3.bf16.msra.mxu0 %v929_v16  ;;  %948 = vmatpush3.bf16.msra.mxu1 %v945_v17  ;;  %v217_v30 = vld [vmem:[%s1218_s23 + $0x30] sm:$0xff]  ;;  %v218_v31 = vld [vmem:[%s1218_s23 + $0x38] sm:$0xff]  ;;  %v219_v32 = vld [vmem:[%s1218_s23 + $0x40] sm:$0xff]  ;;  %p1007_p1 = scmp.lt.s32.totalorder %s1005_s29, %s999_s27 }
  0x1d   : > { %934 = vmatprep.subr.bf16.mxu0 %v933_v23  ;;  %950 = vmatprep.subr.bf16.mxu1 %v949_v24  ;;  %v220_v33 = vld [vmem:[%s1218_s23 + $0x48] sm:$0xff]  ;;  %v221_v34 = vld [vmem:[%s1218_s23 + $0x50] sm:$0xff]  ;;  %v222_v35 = vld [vmem:[%s1218_s23 + $0x58] sm:$0xff]  ;;  %p1001_p12 = pnand %p1000_p11, %p1162_p5 }
  0x1e   : > { %v223_v36 = vld [vmem:[%s1218_s23 + $0x60] sm:$0xff]  ;;  %v224_v37 = vld [vmem:[%s1218_s23 + $0x68] sm:$0xff]  ;;  %v225_v38 = vld [vmem:[%s1218_s23 + $0x70] sm:$0xff]  ;;  %p1008_p2 = por %p1007_p1, %p1006_p0 }
  0x1f   : > { %v226_v39 = vld [vmem:[%s1218_s23 + $0x78] sm:$0xff]  ;;  %s615_s23 = scalar_lea.sflag [#allocation3], %s1275_s30  ;;  %p1002_p13 = pneg %p1001_p12 }
  0x20   : > { %936 = vmatpush3.bf16.msra.mxu0 %v933_v23  ;;  %952 = vmatpush3.bf16.msra.mxu1 %v949_v24 }
  0x21   : > { %p1009_p3 = pnand %p1008_p2, %p1002_p13 }
  0x23   : > { %858 = vmatmul.mubr.msk.f32.vlgmr.msra.gmra.mrb[0].mxu0 %vm235_vm0, %v212_v25  ;;  %898 = vmatmul.mubr.msk.f32.vlgmr.msra.gmra.mrb[0].mxu1 %vm235_vm0, %v212_v25 }
  0x24   : > { %860 = vmatprep.mubr.msk.f32.mxu0 %vm235_vm0, %v213_v26  ;;  %900 = vmatprep.mubr.msk.f32.mxu1 %vm235_vm0, %v213_v26 }
  0x27   : > { %861 = vmatmul.mubr.msk.f32.gmra.mrb[2].mxu0 %vm235_vm0, %v214_v27  ;;  %901 = vmatmul.mubr.msk.f32.gmra.mrb[2].mxu1 %vm235_vm0, %v214_v27 }
  0x28   : > { %863 = vmatprep.mubr.msk.f32.mxu0 %vm235_vm0, %v215_v28  ;;  %903 = vmatprep.mubr.msk.f32.mxu1 %vm235_vm0, %v215_v28 }
  0x2b   : > { %864 = vmatmul.mubr.msk.f32.gmra.mrb[4].mxu0 %vm235_vm0, %v216_v29  ;;  %904 = vmatmul.mubr.msk.f32.gmra.mrb[4].mxu1 %vm235_vm0, %v216_v29 }
  0x2c   : > { %866 = vmatprep.mubr.msk.f32.mxu0 %vm235_vm0, %v217_v30  ;;  %906 = vmatprep.mubr.msk.f32.mxu1 %vm235_vm0, %v217_v30 }
  0x2f   : > { %867 = vmatmul.mubr.msk.f32.gmra.mrb[6].mxu0 %vm235_vm0, %v218_v31  ;;  %907 = vmatmul.mubr.msk.f32.gmra.mrb[6].mxu1 %vm235_vm0, %v218_v31 }
  0x30   : > { %869 = vmatprep.mubr.msk.f32.mxu0 %vm235_vm0, %v219_v32  ;;  %909 = vmatprep.mubr.msk.f32.mxu1 %vm235_vm0, %v219_v32 }
  0x33   : > { %870 = vmatmul.mubr.msk.f32.gmra.mrb[8].mxu0 %vm235_vm0, %v220_v33  ;;  %910 = vmatmul.mubr.msk.f32.gmra.mrb[8].mxu1 %vm235_vm0, %v220_v33 }
  0x34   : > { %872 = vmatprep.mubr.msk.f32.mxu0 %vm235_vm0, %v221_v34  ;;  %912 = vmatprep.mubr.msk.f32.mxu1 %vm235_vm0, %v221_v34 }
  0x37   : > { %873 = vmatmul.mubr.msk.f32.gmra.mrb[10].mxu0 %vm235_vm0, %v222_v35  ;;  %913 = vmatmul.mubr.msk.f32.gmra.mrb[10].mxu1 %vm235_vm0, %v222_v35 }
  0x38   : > { %875 = vmatprep.mubr.msk.f32.mxu0 %vm235_vm0, %v223_v36  ;;  %915 = vmatprep.mubr.msk.f32.mxu1 %vm235_vm0, %v223_v36 }
  0x3b   : > { %876 = vmatmul.mubr.msk.f32.gmra.mrb[12].mxu0 %vm235_vm0, %v224_v37  ;;  %916 = vmatmul.mubr.msk.f32.gmra.mrb[12].mxu1 %vm235_vm0, %v224_v37 }
  0x3c   : > { %878 = vmatprep.mubr.msk.f32.mxu0 %vm235_vm0, %v225_v38  ;;  %918 = vmatprep.mubr.msk.f32.mxu1 %vm235_vm0, %v225_v38 }
  0x3f   : > { %879 = vmatmul.mubr.msk.f32.gmra.mrb[14].mxu0 %vm235_vm0, %v226_v39  ;;  %919 = vmatmul.mubr.msk.f32.gmra.mrb[14].mxu1 %vm235_vm0, %v226_v39 }
  0xf6   : > { %v859_v40 = vpop.f32.mrb[0].mxu0  ;;  %v899_v41 = vpop.f32.mrb[0].mxu1 }
  0xf7   : > { %430 = vst [vmem:[%s1278_s6 + $0x8] sm:$0xff] %v859_v40  ;;  %v350_v42 = vpop.f32.mrb[1].mxu0  ;;  %599 = vst [vmem:[%s1281_s8 + $0x8] sm:$0xff] %v899_v41  ;;  %v519_v43 = vpop.f32.mrb[1].mxu1 }
  0xf8   : > { %429 = vst [vmem:[%s1278_s6] sm:$0xff] %v350_v42  ;;  %598 = vst [vmem:[%s1281_s8] sm:$0xff] %v519_v43 }
  0xfa   : > { %v862_v44 = vpop.f32.mrb[2].mxu0  ;;  %v902_v45 = vpop.f32.mrb[2].mxu1 }
  0xfb   : > { %432 = vst [vmem:[%s1278_s6 + $0x18] sm:$0xff] %v862_v44  ;;  %v360_v46 = vpop.f32.mrb[3].mxu0  ;;  %601 = vst [vmem:[%s1281_s8 + $0x18] sm:$0xff] %v902_v45  ;;  %v529_v47 = vpop.f32.mrb[3].mxu1 }
  0xfc   : > { %431 = vst [vmem:[%s1278_s6 + $0x10] sm:$0xff] %v360_v46  ;;  %600 = vst [vmem:[%s1281_s8 + $0x10] sm:$0xff] %v529_v47 }
  0xfe   : > { %v865_v48 = vpop.f32.mrb[4].mxu0  ;;  %v905_v49 = vpop.f32.mrb[4].mxu1 }
  0xff   : > { %434 = vst [vmem:[%s1278_s6 + $0x28] sm:$0xff] %v865_v48  ;;  %v370_v50 = vpop.f32.mrb[5].mxu0  ;;  %603 = vst [vmem:[%s1281_s8 + $0x28] sm:$0xff] %v905_v49  ;;  %v539_v51 = vpop.f32.mrb[5].mxu1 }
 0x100   : > { %433 = vst [vmem:[%s1278_s6 + $0x20] sm:$0xff] %v370_v50  ;;  %602 = vst [vmem:[%s1281_s8 + $0x20] sm:$0xff] %v539_v51 }
 0x102   : > { %v868_v52 = vpop.f32.mrb[6].mxu0  ;;  %v908_v53 = vpop.f32.mrb[6].mxu1 }
 0x103   : > { %436 = vst [vmem:[%s1278_s6 + $0x38] sm:$0xff] %v868_v52  ;;  %v380_v54 = vpop.f32.mrb[7].mxu0  ;;  %605 = vst [vmem:[%s1281_s8 + $0x38] sm:$0xff] %v908_v53  ;;  %v549_v55 = vpop.f32.mrb[7].mxu1 }
 0x104   : > { %435 = vst [vmem:[%s1278_s6 + $0x30] sm:$0xff] %v380_v54  ;;  %604 = vst [vmem:[%s1281_s8 + $0x30] sm:$0xff] %v549_v55 }
 0x106   : > { %v871_v56 = vpop.f32.mrb[8].mxu0  ;;  %v911_v57 = vpop.f32.mrb[8].mxu1 }
 0x107   : > { %438 = vst [vmem:[%s1278_s6 + $0x48] sm:$0xff] %v871_v56  ;;  %v390_v58 = vpop.f32.mrb[9].mxu0  ;;  %607 = vst [vmem:[%s1281_s8 + $0x48] sm:$0xff] %v911_v57  ;;  %v559_v59 = vpop.f32.mrb[9].mxu1 }
 0x108   : > { %437 = vst [vmem:[%s1278_s6 + $0x40] sm:$0xff] %v390_v58  ;;  %606 = vst [vmem:[%s1281_s8 + $0x40] sm:$0xff] %v559_v59 }
 0x10a   : > { %v874_v60 = vpop.f32.mrb[10].mxu0  ;;  %v914_v61 = vpop.f32.mrb[10].mxu1 }
 0x10b   : > { %440 = vst [vmem:[%s1278_s6 + $0x58] sm:$0xff] %v874_v60  ;;  %v400_v62 = vpop.f32.mrb[11].mxu0  ;;  %609 = vst [vmem:[%s1281_s8 + $0x58] sm:$0xff] %v914_v61  ;;  %v569_v63 = vpop.f32.mrb[11].mxu1 }
 0x10c   : > { %439 = vst [vmem:[%s1278_s6 + $0x50] sm:$0xff] %v400_v62  ;;  %608 = vst [vmem:[%s1281_s8 + $0x50] sm:$0xff] %v569_v63 }
 0x10e   : > { %v877_v0 = vpop.f32.mrb[12].mxu0  ;;  %v917_v1 = vpop.f32.mrb[12].mxu1 }
 0x10f   : > { %442 = vst [vmem:[%s1278_s6 + $0x68] sm:$0xff] %v877_v0  ;;  %v410_v2 = vpop.f32.mrb[13].mxu0  ;;  %611 = vst [vmem:[%s1281_s8 + $0x68] sm:$0xff] %v917_v1  ;;  %v579_v3 = vpop.f32.mrb[13].mxu1 }
 0x110   : > { %441 = vst [vmem:[%s1278_s6 + $0x60] sm:$0xff] %v410_v2  ;;  %610 = vst [vmem:[%s1281_s8 + $0x60] sm:$0xff] %v579_v3 }
 0x112   : > { %v880_v4 = vpop.f32.mrb[14].mxu0  ;;  %v920_v5 = vpop.f32.mrb[14].mxu1 }
 0x113   : > { %444 = vst [vmem:[%s1278_s6 + $0x78] sm:$0xff] %v880_v4  ;;  %v420_v6 = vpop.f32.mrb[15].mxu0  ;;  %613 = vst [vmem:[%s1281_s8 + $0x78] sm:$0xff] %v920_v5  ;;  %v589_v7 = vpop.f32.mrb[15].mxu1 }
 0x114   : > { %443 = vst [vmem:[%s1278_s6 + $0x70] sm:$0xff] %v420_v6  ;;  %612 = vst [vmem:[%s1281_s8 + $0x70] sm:$0xff] %v589_v7 }
 0x115   : > { %1012 = shalt.err (!%p1009_p3)
}
 0x116   : > { %s1013_s5 = scalar_lea.hbm %s1316_s14, 2048  ;;  %s1017_s9 = scalar_lea.hbm %s1405_s3, 4096 }
 0x117   : > { %p1014_p4 = scmp.ne.s32.totalorder %s1316_s14, %s1013_s5  ;;  %p1018_p9 = scmp.lt.u32.totalorder %s1316_s14, %s1405_s3 }
 0x118   : > { %p1019_p10 = scmp.lt.u32.totalorder %s1017_s9, %s1013_s5  ;;  %p1021_p12 = scmp.lt.u32.totalorder %s1013_s5, %s1316_s14 }
 0x119   : > { %p1015_p7 = pnand %p1014_p4, %p1162_p5 }
 0x11a   : > { %p1020_p11 = por %p1019_p10, %p1018_p9 }
 0x11b   : > { %p1016_p8 = pneg %p1015_p7 }
 0x11c   : > { %p1022_p13 = por %p1021_p12, %p1020_p11 }
 0x11e   : > { %p1023_p0 = pnand %p1022_p13, %p1016_p8 }
 0x120   : > { %1026 = shalt.err (!%p1023_p0)
}
 0x121   : > { %s1096_s19 = smov 128   ;;  %s1097_s20 = smov 8  }
 0x122   : > { %953 = dma.vmem_to_hbm [thread:$0]  (%p1162_p5), %s1318_s10, 2048, %s1316_s14, %s615_s23, %s1096_s19, %s1096_s19, %s1097_s20  }
 0x123   : > { %s620_s27 = scalar_lea.sflag [#allocation5], %s1275_s30  ;;  %s1027_s28 = scalar_lea.vmem %s1326_s11, 2048 }
 0x124   : > { %p1028_p1 = scmp.ne.s32.totalorder %s1326_s11, %s1027_s28  ;;  %s1098_s7 = smov [#allocation4]  }
 0x125   : > { %s1031_s29 = sshll.u32 %s1098_s7, 4  ;;  %s1032_s29 = int_to_ptr.vmem [resolvable:$false] %s1031_s29 }
 0x126   : > { %p1029_p2 = pnand %p1028_p1, %p1162_p5  ;;  %s1033_s5 = scalar_lea.vmem %s1032_s29, 4096 }
 0x127   : > { %p1034_p4 = scmp.lt.s32.totalorder %s1326_s11, %s1032_s29  ;;  %p1035_p7 = scmp.lt.s32.totalorder %s1033_s5, %s1027_s28 }
 0x128   : > { %p1030_p3 = pneg %p1029_p2 }
 0x129   : > { %p1036_p8 = por %p1035_p7, %p1034_p4 }
 0x12b   : > { %p1037_p9 = pnand %p1036_p8, %p1030_p3 }
 0x12d   : > { %1040 = shalt.err (!%p1037_p9)
}
 0x12e   : > { %s1041_s10 = scalar_lea.hbm %s1324_s22, 2048  ;;  %s1045_s6 = scalar_lea.hbm %s1406_s4, 4096 }
 0x12f   : > { %p1042_p10 = scmp.ne.s32.totalorder %s1324_s22, %s1041_s10  ;;  %p1046_p13 = scmp.lt.u32.totalorder %s1324_s22, %s1406_s4 }
 0x130   : > { %p1047_p0 = scmp.lt.u32.totalorder %s1045_s6, %s1041_s10  ;;  %p1049_p2 = scmp.lt.u32.totalorder %s1041_s10, %s1324_s22 }
 0x131   : > { %p1043_p11 = pnand %p1042_p10, %p1162_p5 }
 0x132   : > { %p1048_p1 = por %p1047_p0, %p1046_p13 }
 0x133   : > { %p1044_p12 = pneg %p1043_p11 }
 0x134   : > { %p1050_p3 = por %p1049_p2, %p1048_p1 }
 0x136   : > { %p1051_p4 = pnand %p1050_p3, %p1044_p12 }
 0x138   : > { %1054 = shalt.err (!%p1051_p4)
}
 0x139   : > { %954 = dma.vmem_to_hbm [thread:$0]  (%p1162_p5), %s1326_s11, 2048, %s1324_s22, %s620_s27, %s1096_s19, %s1096_s19, %s1097_s20  }
 0x13a PF: > { %p964_p7 = scmp.ge.s32.totalorder %s1093_s18, 2  ;;  %s664_s12 = sand.u32 1, %s1081_s15  }
 0x13b   : > { %s665_s13 = scalar_lea.sflag [#allocation3], %s664_s12 }
 0x13c   : > { %p958_p8 = pnand %p964_p7, %p1166_p6 }
 0x13e   : > { %1072 = dma.done.wait (!%p958_p8), %s665_s13, 2048  }
 0x13f   : > { %1074 = vsyncadd (!%p958_p8), %s665_s13, 4294965248  ;;  %s674_s25 = scalar_lea.sflag [#allocation5], %s664_s12 }
 0x140   : > { %1076 = dma.done.wait (!%p958_p8), %s674_s25, 2048  }
 0x141   : > { %1078 = vsyncadd (!%p958_p8), %s674_s25, 4294965248  ;;  %p18_p5 = scmp.ge.s32.totalorder %s1149_s21, 4   ;;  %s1409_s15 = smov %s1085_s16 }
 0x142   : > { %s1410_s16 = smov %s1089_s17  ;;  %s1411_s17 = smov %s1160_s24 }
 0x143   : > { %s1412_s18 = smov %s1149_s21  ;;  %20 = sbr.rel (!%p18_p5) target bundleno = 5 (0x5), region = 84 }
 0x14a   :  { %679 = vsyncpa [#allocation3], 1 }
 0x14b   :  { %681 = vsyncpa [#allocation3 + $0x1], 1 }
 0x14c   :  { %682 = vsyncpa [#allocation5], 1 }
 0x14d   :  { %684 = vsyncpa [#allocation5 + $0x1], 1 }

</bundles_post_ra>
